<compile_context>
chip_gen: v7x
topology: tpu7x:2x2x1
jax: 0.10.0
libtpu: 0.0.40
codegen_flags: <defaults>
</compile_context>

<pallas_src>
import functools

import jax
import jax.numpy as jnp
from jax import lax
from jax.experimental import pallas as pl
from jax.experimental.pallas import tpu as pltpu


# --------------------------------------------------------------------------
# Kernels
# --------------------------------------------------------------------------
def _pruned_linear_kernel_accout(x_ref, w_ref, m_ref, b_ref, o_ref):
    """f32 output: accumulate directly into the K-invariant output tile.

    Grid = (M//tm, N//tn, K//tk). Tiles:
       x:    (tm, tk) at (i, k)
       w/m:  (tk, tn) at (k, j)     ([in, out] layout -> plain MXU matmul)
       bias: (1,  tn) at (0, j)
       out:  (tm, tn) at (i, j)     (VMEM-resident across k)
    """
    k = pl.program_id(2)

    @pl.when(k == 0)
    def _():
        # Fold bias into the init; no finalize pass needed.
        o_ref[...] = jnp.broadcast_to(b_ref[...].astype(o_ref.dtype), o_ref.shape)

    # Pruning mask applied on the VPU (int8/bool/float -> weight dtype), then
    # a straight (tm,tk)x(tk,tn) MXU contraction with f32 accumulation.
    masked_w = w_ref[...] * m_ref[...].astype(w_ref.dtype)
    o_ref[...] += lax.dot_general(
        x_ref[...],
        masked_w,
        dimension_numbers=(((1,), (0,)), ((), ())),
        preferred_element_type=jnp.float32,
    )


def _pruned_linear_kernel_scratch(x_ref, w_ref, m_ref, b_ref, o_ref, acc_ref):
    """Non-f32 output (e.g. bf16): f32 VMEM scratch accumulator + final cast."""
    k = pl.program_id(2)

    @pl.when(k == 0)
    def _():
        acc_ref[...] = jnp.zeros_like(acc_ref)

    masked_w = w_ref[...] * m_ref[...].astype(w_ref.dtype)
    acc_ref[...] += lax.dot_general(
        x_ref[...],
        masked_w,
        dimension_numbers=(((1,), (0,)), ((), ())),
        preferred_element_type=jnp.float32,
    )

    @pl.when(k == pl.num_programs(2) - 1)
    def _():
        o_ref[...] = (acc_ref[...] + b_ref[...].astype(jnp.float32)).astype(o_ref.dtype)


# --------------------------------------------------------------------------
# Helpers
# --------------------------------------------------------------------------
def _round_up(x, m):
    return (x + m - 1) // m * m


def _vmem_limit_bytes():
    """Generation-aware scoped-VMEM limit (leave ~25% headroom)."""
    cap = 64 << 20  # assume the smallest per-TC VMEM (v7x) if query fails
    try:
        cap = int(pltpu.get_tpu_info().vmem_capacity_bytes)
    except Exception:
        pass
    return min(cap * 3 // 4, 96 << 20)


def _select_tiles(B, out_f, in_f):
    # Single M tile (no M re-streaming of weights) up to 1024 rows; otherwise
    # pick the tile that minimizes M padding (largest tile on ties).
    if B <= 1024:
        tm = _round_up(B, 8)
    else:
        tm = min((512, 384, 256, 128), key=lambda t: (_round_up(B, t) - B, -t))
    tn = min(_round_up(out_f, 128), 512)
    tk = min(_round_up(in_f, 128), 1024)
    return tm, tn, tk


def prepare_pruned_linear_params(weight, pruning_mask, bias=None):
    """One-time setup, hoisted out of the per-call hot path.

    weight:       [out, in]   (torch nn.Linear layout)
    pruning_mask: [out, in]   binary (any int/bool dtype) or soft float mask
    bias:         [out] or None
    Returns (weight_io [in, out], mask_io [in, out], bias_row [1, out] | None).
    """
    weight_io = jnp.asarray(weight).T
    m = jnp.asarray(pruning_mask)
    if m.dtype == jnp.bool_ or jnp.issubdtype(m.dtype, jnp.integer):
        mask_io = m.astype(jnp.int8).T  # binary mask -> cheap int8 HBM stream
    else:
        mask_io = m.T  # soft/float mask: keep dtype so semantics stay exact
    bias_row = None if bias is None else jnp.asarray(bias).reshape(1, -1)
    return weight_io, mask_io, bias_row


# --------------------------------------------------------------------------
# Wrapper
# --------------------------------------------------------------------------
@functools.partial(jax.jit, static_argnames=("tm", "tn", "tk"))
def pruned_linear(x, weight_io, mask_io, bias_row=None, *, tm=None, tn=None, tk=None):
    """x: [B, in]; weight_io/mask_io: [in, out]; bias_row: [1, out] or None."""
    B, in_f = x.shape
    in_f2, out_f = weight_io.shape
    assert in_f2 == in_f and mask_io.shape == weight_io.shape

    auto_tn = tn is None
    _tm, _tn, _tk = _select_tiles(B, out_f, in_f)
    tm = _tm if tm is None else tm
    tn = _tn if auto_tn else tn
    tk = _tk if tk is None else tk

    Mp = _round_up(B, tm)
    Np = _round_up(out_f, tn)
    Kp = _round_up(in_f, tk)

    # v7x megacore: keep >=2 steps in a "parallel" grid axis when possible so
    # the second TensorCore isn't idle (no-op on 1-TC v5e/v6e).
    if auto_tn and Mp // tm == 1 and Np // tn == 1 and tn >= 256 and tn % 256 == 0:
        tn //= 2  # Np stays a multiple of tn

    # Pad only when needed (shapes are static at trace time); zero padding is
    # exact for the matmul and padded rows/cols are sliced off below.
    xp = x if (Mp == B and Kp == in_f) else jnp.pad(x, ((0, Mp - B), (0, Kp - in_f)))
    if Kp == in_f and Np == out_f:
        wp, mp = weight_io, mask_io
    else:
        wp = jnp.pad(weight_io, ((0, Kp - in_f), (0, Np - out_f)))
        mp = jnp.pad(mask_io, ((0, Kp - in_f), (0, Np - out_f)))
    if bias_row is None:
        bp = jnp.zeros((1, Np), dtype=x.dtype)
    else:
        bp = bias_row if Np == out_f else jnp.pad(bias_row, ((0, 0), (0, Np - out_f)))

    grid = (Mp // tm, Np // tn, Kp // tk)
    out_dtype = x.dtype

    # TODO(synk): if profiling shows exposed DMA on the weight/mask stream,
    # add pipeline_mode=pl.Buffered(3) on the weight/mask BlockSpecs.
    in_specs = [
        pl.BlockSpec((tm, tk), lambda i, j, k: (i, k)),  # x
        pl.BlockSpec((tk, tn), lambda i, j, k: (k, j)),  # weight [in, out]
        pl.BlockSpec((tk, tn), lambda i, j, k: (k, j)),  # mask   [in, out]
        pl.BlockSpec((1, tn), lambda i, j, k: (0, j)),   # bias row
    ]
    out_spec = pl.BlockSpec((tm, tn), lambda i, j, k: (i, j))

    if out_dtype == jnp.float32:
        kernel, scratch = _pruned_linear_kernel_accout, []
    else:
        kernel = _pruned_linear_kernel_scratch
        scratch = [pltpu.VMEM((tm, tn), jnp.float32)]

    out = pl.pallas_call(
        kernel,
        out_shape=jax.ShapeDtypeStruct((Mp, Np), out_dtype),
        grid_spec=pltpu.PrefetchScalarGridSpec(
            num_scalar_prefetch=0,
            grid=grid,
            in_specs=in_specs,
            out_specs=out_spec,
            scratch_shapes=scratch,
        ),
        compiler_params=pltpu.CompilerParams(
            dimension_semantics=("parallel", "parallel", "arbitrary"),
            vmem_limit_bytes=_vmem_limit_bytes(),
        ),
    )(xp, wp, mp, bp)

    if Mp == B and Np == out_f:
        return out
    return out[:B, :out_f]


# --------------------------------------------------------------------------
# Example / correctness check
# --------------------------------------------------------------------------
if __name__ == "__main__":
    key = jax.random.PRNGKey(0)
    k_x, k_w, k_b, k_m = jax.random.split(key, 4)

    batch, in_features, out_features = 8, 256, 128

    x = jax.random.normal(k_x, (batch, in_features), dtype=jnp.float32)
    weight = (
        jax.random.normal(k_w, (out_features, in_features), dtype=jnp.float32) * 0.1
    )
    bias = jax.random.normal(k_b, (out_features,), dtype=jnp.float32) * 0.1
    # Binary pruning mask (keep ~70% of weights). Passing it as bool/int lets
    # the prep step store it as int8 (cheap HBM stream).
    pruning_mask = jax.random.uniform(k_m, (out_features, in_features)) < 0.7

    # One-time setup (hoisted out of the per-call path).
    w_io, m_io, b_row = prepare_pruned_linear_params(weight, pruning_mask, bias)

    # f32 path.
    y = pruned_linear(x, w_io, m_io, b_row)
    jax.block_until_ready(y)

    # Reference (same math as torch.nn.functional.linear), high precision.
    masked_w = weight * pruning_mask.astype(weight.dtype)
    y_ref = jnp.dot(x, masked_w.T, precision=jax.lax.Precision.HIGHEST) + bias
    assert y.shape == y_ref.shape, "shape mismatch vs reference"
    assert jnp.allclose(y, y_ref, atol=1e-3, rtol=1e-3), "f32 mismatch vs reference"

    # bf16 fast path (native MXU dtype on v5e/v6e/v7x, f32 accumulation).
    y_bf16 = pruned_linear(
        x.astype(jnp.bfloat16), w_io.astype(jnp.bfloat16), m_io, b_row
    )
    jax.block_until_ready(y_bf16)
    assert jnp.allclose(
        y_bf16.astype(jnp.float32), y_ref, atol=3e-2, rtol=3e-2
    ), "bf16 mismatch vs reference"

    print("KERNEL_OK")
</pallas_src>

<mosaic_0001>
module attributes {stable_mosaic.version = 11 : i64} {
  func.func @_pruned_linear_kernel_accout(%arg0: i32, %arg1: i32, %arg2: i32, %arg3: memref<8x256xf32, #tpu.memory_space<vmem>>, %arg4: memref<256x128xf32, #tpu.memory_space<vmem>>, %arg5: memref<256x128xi8, #tpu.memory_space<vmem>>, %arg6: memref<1x128xf32, #tpu.memory_space<vmem>>, %arg7: memref<8x128xf32, #tpu.memory_space<vmem>>) attributes {dimension_semantics = [#tpu.dimension_semantics<parallel>, #tpu.dimension_semantics<parallel>, #tpu.dimension_semantics<arbitrary>], iteration_bounds = array<i64: 1, 1, 1>, scalar_prefetch = 0 : i64, scratch_operands = 0 : i64, tpu.core_type = #tpu.core_type<tc>, window_params = [{transform_indices = @transform_0, window_bounds = array<i64: 8, 256>}, {transform_indices = @transform_1, window_bounds = array<i64: 256, 128>}, {transform_indices = @transform_2, window_bounds = array<i64: 256, 128>}, {transform_indices = @transform_3, window_bounds = array<i64: 1, 128>}, {transform_indices = @transform_4, window_bounds = array<i64: 8, 128>}]} {
    %c0_i32 = arith.constant 0 : i32
    %0 = arith.cmpi eq, %arg2, %c0_i32 : i32
    %1 = arith.extui %0 : i1 to i32
    %c0_i32_0 = arith.constant 0 : i32
    %2 = arith.cmpi ne, %1, %c0_i32_0 : i32
    scf.if %2 {
      %c0_10 = arith.constant 0 : index
      %c0_11 = arith.constant 0 : index
      %12 = vector.load %arg6[%c0_10, %c0_11] : memref<1x128xf32, #tpu.memory_space<vmem>>, vector<1x128xf32>
      %13 = vector.shape_cast %12 : vector<1x128xf32> to vector<1x128xf32>
      %14 = vector.broadcast %13 : vector<1x128xf32> to vector<8x128xf32>
      %c0_12 = arith.constant 0 : index
      %c0_13 = arith.constant 0 : index
      %15 = vector.load %arg7[%c0_12, %c0_13] : memref<8x128xf32, #tpu.memory_space<vmem>>, vector<8x128xf32>
      tpu.vector_store %arg7[%c0_12, %c0_13], %14 {strides = array<i32>} : memref<8x128xf32, #tpu.memory_space<vmem>>, vector<8x128xf32>,
    } else {
    }
    %c0 = arith.constant 0 : index
    %c0_1 = arith.constant 0 : index
    %3 = vector.load %arg4[%c0, %c0_1] : memref<256x128xf32, #tpu.memory_space<vmem>>, vector<256x128xf32>
    %c0_2 = arith.constant 0 : index
    %c0_3 = arith.constant 0 : index
    %4 = vector.load %arg5[%c0_2, %c0_3] : memref<256x128xi8, #tpu.memory_space<vmem>>, vector<256x128xi8>
    %5 = arith.sitofp %4 : vector<256x128xi8> to vector<256x128xf32>
    %6 = arith.mulf %3, %5 : vector<256x128xf32>
    %c0_4 = arith.constant 0 : index
    %c0_5 = arith.constant 0 : index
    %7 = vector.load %arg7[%c0_4, %c0_5] : memref<8x128xf32, #tpu.memory_space<vmem>>, vector<8x128xf32>
    %c0_6 = arith.constant 0 : index
    %c0_7 = arith.constant 0 : index
    %8 = vector.load %arg3[%c0_6, %c0_7] : memref<8x256xf32, #tpu.memory_space<vmem>>, vector<8x256xf32>
    %cst = arith.constant dense<0.000000e+00> : vector<8x128xf32>
    %9 = tpu.matmul %8, %6, %cst {dimension_numbers = #tpu.dot_dimension_numbers<[1], [0], [0], [1], [0, 0, 1, 1], [], []>} : vector<8x256xf32>, vector<256x128xf32>, vector<8x128xf32> -> vector<8x128xf32>
    %10 = arith.addf %7, %9 : vector<8x128xf32>
    %c0_8 = arith.constant 0 : index
    %c0_9 = arith.constant 0 : index
    %11 = vector.load %arg7[%c0_8, %c0_9] : memref<8x128xf32, #tpu.memory_space<vmem>>, vector<8x128xf32>
    tpu.vector_store %arg7[%c0_8, %c0_9], %10 {strides = array<i32>} : memref<8x128xf32, #tpu.memory_space<vmem>>, vector<8x128xf32>,
    return
  }
  func.func @transform_0(%arg0: i32, %arg1: i32, %arg2: i32) -> (i32, i32) {
    %c0_i32 = arith.constant 0 : i32
    return %arg0, %arg2 : i32, i32
  }
  func.func @transform_1(%arg0: i32, %arg1: i32, %arg2: i32) -> (i32, i32) {
    %c0_i32 = arith.constant 0 : i32
    return %arg2, %arg1 : i32, i32
  }
  func.func @transform_2(%arg0: i32, %arg1: i32, %arg2: i32) -> (i32, i32) {
    %c0_i32 = arith.constant 0 : i32
    return %arg2, %arg1 : i32, i32
  }
  func.func @transform_3(%arg0: i32, %arg1: i32, %arg2: i32) -> (i32, i32) {
    %c0_i32 = arith.constant 0 : i32
    %c0_i32_0 = arith.constant 0 : i32
    return %c0_i32, %arg1 : i32, i32
  }
  func.func @transform_4(%arg0: i32, %arg1: i32, %arg2: i32) -> (i32, i32) {
    %c0_i32 = arith.constant 0 : i32
    return %arg0, %arg1 : i32, i32
  }
}

</mosaic_0001>

<bundles_post_ra>
// kernel: pruned_linear.1
= control target key start
LH: loop header
LB: loop body
LE: loop exit
PB: predicated region body
PF: predicated region fallthrough
CT: control target
= control target key end

     0   :  { %9 = vsyncpa [#allocation3], 0  ;;  %s552_s0 = inlined_call_operand.hbm [shape: f32[8,256], index: 0, kind: input, shape index: {}]   ;;  %s553_s1 = inlined_call_operand.hbm [shape: f32[256,128], index: 1, kind: input, shape index: {}]   ;;  %s554_s2 = inlined_call_operand.hbm [shape: s8[256,128], index: 2, kind: input, shape index: {}]   ;;  %s555_s3 = inlined_call_operand.vmem [shape: f32[1,128], index: 3, kind: input, shape index: {}]   ;;  %s556_s4 = inlined_call_operand.hbm [shape: f32[8,128], index: 4, kind: output, shape index: {}]  }
   0x1   :  { %10 = vsyncpa [#allocation6], 0 }
   0x2   :  { %11 = vsyncpa [#allocation4], 0  ;;  %s464_s15 = smov [#allocation5]   ;;  %s370_s19 = scalar_lea.hbm %s553_s1, 4096 }
   0x3   :  { %s27_s16 = sshll.u32 %s464_s15, 4  ;;  %p371_p0 = scmp.ne.s32.totalorder %s553_s1, %s370_s19  ;;  %s28_s16 = int_to_ptr.vmem [resolvable:$true] %s27_s16 }
   0x4   :  { %p374_p1 = scmp.lt.u32.totalorder %s370_s19, %s553_s1 }
   0x6   :  { %p376_p2 = pnand %p374_p1, %p371_p0 }
   0x8   :  { %379 = shalt.err (!%p376_p2)
}
   0x9   :  { %s380_s24 = scalar_lea.vmem %s28_s16, 4096  ;;  %p385_p4 = scmp.lt.s32.totalorder %s28_s16, %s28_s16 }
   0xa   :  { %p381_p3 = scmp.ne.s32.totalorder %s28_s16, %s380_s24  ;;  %p386_p5 = scmp.lt.s32.totalorder %s380_s24, %s380_s24 }
   0xc   :  { %p387_p6 = por %p386_p5, %p385_p4 }
   0xe   :  { %p388_p7 = pnand %p387_p6, %p381_p3 }
  0x10   :  { %391 = shalt.err (!%p388_p7)
}
  0x11   :  { %s465_s25 = smov 128   ;;  %s466_s26 = smov 8  }
  0x12   :  { %33 = dma.hbm_to_vmem [thread:$0]  %s553_s1, 4096, %s28_s16, [#allocation6], %s465_s25, %s465_s25, %s466_s26  }
  0x13   :  { %s467_s29 = smov [#allocation2]   ;;  %s468_s5 = smov [#allocation7]  }
  0x14   :  { %s18_s30 = sshll.u32 %s467_s29, 4  ;;  %s39_s6 = sshll.u32 %s468_s5, 4  ;;  %s19_s30 = int_to_ptr.vmem [resolvable:$true] %s18_s30  ;;  %s40_s6 = int_to_ptr.vmem [resolvable:$true] %s39_s6 }
  0x15   :  { %s392_s9 = scalar_lea.hbm %s552_s0, 256 }
  0x16   :  { %p393_p8 = scmp.ne.s32.totalorder %s552_s0, %s392_s9  ;;  %p396_p9 = scmp.lt.u32.totalorder %s392_s9, %s552_s0 }
  0x18   :  { %p398_p10 = pnand %p396_p9, %p393_p8 }
  0x1a   :  { %401 = shalt.err (!%p398_p10)
}
  0x1b   :  { %s402_s1 = scalar_lea.vmem %s19_s30, 256  ;;  %p407_p12 = scmp.lt.s32.totalorder %s19_s30, %s19_s30 }
  0x1c   :  { %p403_p11 = scmp.ne.s32.totalorder %s19_s30, %s402_s1  ;;  %p408_p13 = scmp.lt.s32.totalorder %s402_s1, %s402_s1 }
  0x1e   :  { %p409_p0 = por %p408_p13, %p407_p12 }
  0x20   :  { %p410_p1 = pnand %p409_p0, %p403_p11 }
  0x22   :  { %413 = shalt.err (!%p410_p1)
}
  0x23   :  { %21 = dma.hbm_to_vmem [thread:$0]  %s552_s0, 256, %s19_s30, [#allocation3]  }
  0x24   :  { %s414_s18 = scalar_lea.hbm %s554_s2, 1024 }
  0x25   :  { %p415_p2 = scmp.ne.s32.totalorder %s554_s2, %s414_s18  ;;  %p418_p3 = scmp.lt.u32.totalorder %s414_s18, %s554_s2 }
  0x27   :  { %p420_p4 = pnand %p418_p3, %p415_p2 }
  0x29   :  { %423 = shalt.err (!%p420_p4)
}
  0x2a   :  { %s424_s23 = scalar_lea.vmem %s40_s6, 1024  ;;  %p429_p6 = scmp.lt.s32.totalorder %s40_s6, %s40_s6 }
  0x2b   :  { %p425_p5 = scmp.ne.s32.totalorder %s40_s6, %s424_s23  ;;  %p430_p7 = scmp.lt.s32.totalorder %s424_s23, %s424_s23 }
  0x2d   :  { %p431_p8 = por %p430_p7, %p429_p6 }
  0x2f   :  { %p432_p9 = pnand %p431_p8, %p425_p5 }
  0x31   :  { %435 = shalt.err (!%p432_p9)
}
  0x32   :  { %45 = dma.hbm_to_vmem [thread:$0]  %s554_s2, 1024, %s40_s6, [#allocation6], %s465_s25, %s465_s25, %s466_s26  }
  0x33   :  { %458 = dma.done.wait [#allocation3], 256  }
  0x34   :  { %459 = vsyncadd [#allocation3], 4294967040 }
  0x35   :  { %460 = dma.done.wait [#allocation6], 5120  }
  0x36   :  { %461 = vsyncadd [#allocation6], 4294962176  ;;  %v105_v0 = vld [vmem:[#allocation7 + $0x20] sm:$0xff]  ;;  %v86_v2 = vld [vmem:[#allocation5 + $0x88] sm:$0xff]  ;;  %s469_s26 = smov [#allocation8]  }
  0x37   :  { %v85_v1 = vld [vmem:[#allocation5 + $0x80] sm:$0xff]  ;;  %v125_v3 = vunpack.c.0.s8 %v105_v0  ;;  %v126_v4 = vunpack.c.1.s8 %v105_v0  ;;  %v127_v6 = vunpack.c.2.s8 %v105_v0  ;;  %v128_v7 = vunpack.c.3.s8 %v105_v0  ;;  %v87_v11 = vld [vmem:[#allocation5 + $0x90] sm:$0xff]  ;;  %v88_v12 = vld [vmem:[#allocation5 + $0x98] sm:$0xff]  ;;  %s286_s27 = sshll.u32 %s469_s26, 4  ;;  %s287_s27 = int_to_ptr.vmem [resolvable:$true] %s286_s27 }
  0x38   :  { %v101_v5 = vld [vmem:[#allocation7] sm:$0xff]  ;;  %v70_v17 = vld [vmem:[#allocation5 + $0x8] sm:$0xff]  ;;  %v71_v20 = vld [vmem:[#allocation5 + $0x10] sm:$0xff]  ;;  %s436_s28 = scalar_lea.vmem %s287_s27, 128  ;;  %p441_p11 = scmp.lt.s32.totalorder %s287_s27, %s287_s27 }
  0x39   :  { %v69_v8 = vld [vmem:[#allocation5] sm:$0xff]  ;;  %v109_v9 = vunpack.c.0.s8 %v101_v5  ;;  %v110_v10 = vunpack.c.1.s8 %v101_v5  ;;  %v111_v13 = vunpack.c.2.s8 %v101_v5  ;;  %v112_v14 = vunpack.c.3.s8 %v101_v5  ;;  %v72_v21 = vld [vmem:[#allocation5 + $0x18] sm:$0xff]  ;;  %v106_v26 = vld [vmem:[#allocation7 + $0x28] sm:$0xff]  ;;  %p437_p10 = scmp.ne.s32.totalorder %s287_s27, %s436_s28  ;;  %p442_p12 = scmp.lt.s32.totalorder %s436_s28, %s436_s28 }
  0x3a   :  { %v157_v15 = vcvt.s32.f32 %v125_v3  ;;  %v158_v16 = vcvt.s32.f32 %v126_v4  ;;  %v159_v18 = vcvt.s32.f32 %v127_v6  ;;  %v160_v19 = vcvt.s32.f32 %v128_v7  ;;  %v102_v31 = vld [vmem:[#allocation7 + $0x8] sm:$0xff]  ;;  %v89_v42 = vld [vmem:[#allocation5 + $0xa0] sm:$0xff]  ;;  %v91_v54 = vld [vmem:[#allocation5 + $0xb0] sm:$0xff] }
  0x3b   :  { %v141_v22 = vcvt.s32.f32 %v109_v9  ;;  %v142_v23 = vcvt.s32.f32 %v110_v10  ;;  %v143_v24 = vcvt.s32.f32 %v111_v13  ;;  %v144_v25 = vcvt.s32.f32 %v112_v14  ;;  %v90_v43 = vld [vmem:[#allocation5 + $0xa8] sm:$0xff]  ;;  %v73_v48 = vld [vmem:[#allocation5 + $0x20] sm:$0xff]  ;;  %v92_v55 = vld [vmem:[#allocation5 + $0xb8] sm:$0xff]  ;;  %p443_p13 = por %p442_p12, %p441_p11 }
  0x3c   :  { %v189_v27 = vmul.f32 %v157_v15, %v85_v1  ;;  %v190_v28 = vmul.f32 %v158_v16, %v86_v2  ;;  %v191_v29 = vmul.f32 %v159_v18, %v87_v11  ;;  %v192_v30 = vmul.f32 %v160_v19, %v88_v12  ;;  %v74_v49 = vld [vmem:[#allocation5 + $0x28] sm:$0xff]  ;;  %v107_v58 = vld [vmem:[#allocation7 + $0x30] sm:$0xff]  ;;  %v76_v0 = vld [vmem:[#allocation5 + $0x38] sm:$0xff] }
  0x3d   :  { %v173_v32 = vmul.f32 %v141_v22, %v69_v8  ;;  %v174_v33 = vmul.f32 %v142_v23, %v70_v17  ;;  %v175_v34 = vmul.f32 %v143_v24, %v71_v20  ;;  %v176_v35 = vmul.f32 %v144_v25, %v72_v21  ;;  %v75_v63 = vld [vmem:[#allocation5 + $0x30] sm:$0xff]  ;;  %v207_v10 = vld [vmem:[#allocation2 + $0x8] sm:$0xff]  ;;  %v93_v14 = vld [vmem:[#allocation5 + $0xc0] sm:$0xff]  ;;  %p444_p0 = pnand %p443_p13, %p437_p10 }
  0x3e   :  { %v332_v36 = vpack.c.bf16 %v190_v28, %v189_v27  ;;  %v336_v37 = vpack.c.bf16 %v192_v30, %v191_v29  ;;  %v129_v38 = vunpack.c.0.s8 %v106_v26  ;;  %v130_v39 = vunpack.c.1.s8 %v106_v26  ;;  %v103_v5 = vld [vmem:[#allocation7 + $0x10] sm:$0xff]  ;;  %272 = vmatprep.mubr.f32.mxu0 %v207_v10  ;;  %v94_v17 = vld [vmem:[#allocation5 + $0xc8] sm:$0xff]  ;;  %v77_v23 = vld [vmem:[#allocation5 + $0x40] sm:$0xff] }
  0x3f   :  { %v334_v40 = vpack.c.bf16 %v174_v33, %v173_v32  ;;  %v338_v41 = vpack.c.bf16 %v176_v35, %v175_v34  ;;  %v113_v44 = vunpack.c.0.s8 %v102_v31  ;;  %v114_v45 = vunpack.c.1.s8 %v102_v31  ;;  %v78_v24 = vld [vmem:[#allocation5 + $0x48] sm:$0xff]  ;;  %v108_v27 = vld [vmem:[#allocation7 + $0x38] sm:$0xff] }
  0x40   :  { %333 = vmatprep.subr.bf16.mxu0 %v332_v36  ;;  %v161_v46 = vcvt.s32.f32 %v129_v38  ;;  %v162_v47 = vcvt.s32.f32 %v130_v39  ;;  %v131_v50 = vunpack.c.2.s8 %v106_v26  ;;  %v132_v51 = vunpack.c.3.s8 %v106_v26  ;;  %v96_v32 = vld [vmem:[#allocation5 + $0xd8] sm:$0xff] }
  0x41   :  { %335 = vmatpush3.bf16.msra.mxu0 %v334_v40  ;;  %v145_v52 = vcvt.s32.f32 %v113_v44  ;;  %v146_v53 = vcvt.s32.f32 %v114_v45  ;;  %v115_v56 = vunpack.c.2.s8 %v102_v31  ;;  %v116_v57 = vunpack.c.3.s8 %v102_v31  ;;  %v95_v31 = vld [vmem:[#allocation5 + $0xd0] sm:$0xff]  ;;  %v104_v44 = vld [vmem:[#allocation7 + $0x18] sm:$0xff] }
  0x42   :  { %337 = vmatprep.subr.bf16.mxu0 %v336_v37  ;;  %v193_v59 = vmul.f32 %v161_v46, %v89_v42  ;;  %v194_v60 = vmul.f32 %v162_v47, %v90_v43  ;;  %v163_v61 = vcvt.s32.f32 %v131_v50  ;;  %v164_v62 = vcvt.s32.f32 %v132_v51  ;;  %v79_v37 = vld [vmem:[#allocation5 + $0x50] sm:$0xff] }
  0x43   :  { %v177_v1 = vmul.f32 %v145_v52, %v73_v48  ;;  %v178_v2 = vmul.f32 %v146_v53, %v74_v49  ;;  %v147_v3 = vcvt.s32.f32 %v115_v56  ;;  %v148_v4 = vcvt.s32.f32 %v116_v57  ;;  %v97_v49 = vld [vmem:[#allocation5 + $0xe0] sm:$0xff]  ;;  %v98_v56 = vld [vmem:[#allocation5 + $0xe8] sm:$0xff] }
  0x44   :  { %v340_v6 = vpack.c.bf16 %v194_v60, %v193_v59  ;;  %v195_v7 = vmul.f32 %v163_v61, %v91_v54  ;;  %v196_v8 = vmul.f32 %v164_v62, %v92_v55  ;;  %v133_v9 = vunpack.c.0.s8 %v107_v58  ;;  %v81_v61 = vld [vmem:[#allocation5 + $0x60] sm:$0xff]  ;;  %v82_v62 = vld [vmem:[#allocation5 + $0x68] sm:$0xff] }
  0x45   :  { %339 = vmatpush3.bf16.msra.mxu0 %v338_v41  ;;  %v342_v11 = vpack.c.bf16 %v178_v2, %v177_v1  ;;  %v179_v12 = vmul.f32 %v147_v3, %v75_v63  ;;  %v180_v13 = vmul.f32 %v148_v4, %v76_v0  ;;  %v134_v15 = vunpack.c.1.s8 %v107_v58  ;;  %v80_v41 = vld [vmem:[#allocation5 + $0x58] sm:$0xff]  ;;  %v99_v3 = vld [vmem:[#allocation5 + $0xf0] sm:$0xff] }
  0x46   :  { %341 = vmatprep.subr.bf16.mxu0 %v340_v6  ;;  %v344_v16 = vpack.c.bf16 %v196_v8, %v195_v7  ;;  %v165_v18 = vcvt.s32.f32 %v133_v9  ;;  %v117_v19 = vunpack.c.0.s8 %v103_v5  ;;  %v118_v20 = vunpack.c.1.s8 %v103_v5  ;;  %v100_v4 = vld [vmem:[#allocation5 + $0xf8] sm:$0xff] }
  0x47   :  { %v346_v21 = vpack.c.bf16 %v180_v13, %v179_v12  ;;  %v166_v22 = vcvt.s32.f32 %v134_v15  ;;  %v135_v25 = vunpack.c.2.s8 %v107_v58  ;;  %v136_v26 = vunpack.c.3.s8 %v107_v58 }
  0x48   :  { %v197_v28 = vmul.f32 %v165_v18, %v93_v14  ;;  %v149_v29 = vcvt.s32.f32 %v117_v19  ;;  %v150_v30 = vcvt.s32.f32 %v118_v20  ;;  %v119_v33 = vunpack.c.2.s8 %v103_v5  ;;  %v84_v18 = vld [vmem:[#allocation5 + $0x78] sm:$0xff] }
  0x49   :  { %343 = vmatpush3.bf16.msra.mxu0 %v342_v11  ;;  %v198_v34 = vmul.f32 %v166_v22, %v94_v17  ;;  %v167_v35 = vcvt.s32.f32 %v135_v25  ;;  %v168_v36 = vcvt.s32.f32 %v136_v26  ;;  %v120_v38 = vunpack.c.3.s8 %v103_v5  ;;  %v83_v17 = vld [vmem:[#allocation5 + $0x70] sm:$0xff] }
  0x4a   :  { %345 = vmatprep.subr.bf16.mxu0 %v344_v16  ;;  %v181_v39 = vmul.f32 %v149_v29, %v77_v23  ;;  %v182_v40 = vmul.f32 %v150_v30, %v78_v24  ;;  %v151_v42 = vcvt.s32.f32 %v119_v33  ;;  %v137_v43 = vunpack.c.0.s8 %v108_v27  ;;  %v206_v25 = vld [vmem:[#allocation2] sm:$0xff] }
  0x4b   :  { %v348_v45 = vpack.c.bf16 %v198_v34, %v197_v28  ;;  %v199_v46 = vmul.f32 %v167_v35, %v95_v31  ;;  %v200_v47 = vmul.f32 %v168_v36, %v96_v32  ;;  %v152_v48 = vcvt.s32.f32 %v120_v38 }
  0x4c   :  { %v350_v50 = vpack.c.bf16 %v182_v40, %v181_v39  ;;  %v183_v51 = vmul.f32 %v151_v42, %v79_v37  ;;  %v138_v52 = vunpack.c.1.s8 %v108_v27  ;;  %v169_v53 = vcvt.s32.f32 %v137_v43 }
  0x4d   :  { %347 = vmatpush3.bf16.msra.mxu0 %v346_v21  ;;  %v352_v54 = vpack.c.bf16 %v200_v47, %v199_v46  ;;  %v184_v55 = vmul.f32 %v152_v48, %v80_v41  ;;  %v121_v57 = vunpack.c.0.s8 %v104_v44  ;;  %v122_v58 = vunpack.c.1.s8 %v104_v44 }
  0x4e   :  { %349 = vmatprep.subr.bf16.mxu0 %v348_v45  ;;  %v170_v59 = vcvt.s32.f32 %v138_v52  ;;  %v201_v60 = vmul.f32 %v169_v53, %v97_v49  ;;  %v139_v63 = vunpack.c.2.s8 %v108_v27  ;;  %v140_v0 = vunpack.c.3.s8 %v108_v27  ;;  %v296_v27 = vld [vmem:[%s555_s3] ss:$0 sm:$0xff] }
  0x4f   :  { %v153_v1 = vcvt.s32.f32 %v121_v57  ;;  %v154_v2 = vcvt.s32.f32 %v122_v58  ;;  %v123_v5 = vunpack.c.2.s8 %v104_v44  ;;  %v124_v9 = vunpack.c.3.s8 %v104_v44 }
  0x50   :  { %v202_v6 = vmul.f32 %v170_v59, %v98_v56  ;;  %v171_v7 = vcvt.s32.f32 %v139_v63  ;;  %v172_v8 = vcvt.s32.f32 %v140_v0  ;;  %v354_v10 = vpack.c.bf16 %v184_v55, %v183_v51 }
  0x51   :  { %351 = vmatpush3.bf16.msra.mxu0 %v350_v50  ;;  %v185_v11 = vmul.f32 %v153_v1, %v81_v61  ;;  %v186_v12 = vmul.f32 %v154_v2, %v82_v62  ;;  %v155_v13 = vcvt.s32.f32 %v123_v5  ;;  %v156_v19 = vcvt.s32.f32 %v124_v9 }
  0x52   :  { %353 = vmatprep.subr.bf16.mxu0 %v352_v54  ;;  %v356_v14 = vpack.c.bf16 %v202_v6, %v201_v60  ;;  %v203_v15 = vmul.f32 %v171_v7, %v99_v3  ;;  %v204_v16 = vmul.f32 %v172_v8, %v100_v4 }
  0x53   :  { %v358_v20 = vpack.c.bf16 %v186_v12, %v185_v11  ;;  %v187_v21 = vmul.f32 %v155_v13, %v83_v17  ;;  %v188_v22 = vmul.f32 %v156_v19, %v84_v18 }
  0x54   :  { %v360_v23 = vpack.c.bf16 %v204_v16, %v203_v15 }
  0x55   :  { %355 = vmatpush3.bf16.msra.mxu0 %v354_v10  ;;  %v362_v24 = vpack.c.bf16 %v188_v22, %v187_v21 }
  0x56   :  { %357 = vmatprep.subr.bf16.mxu0 %v356_v14 }
  0x59   :  { %359 = vmatpush3.bf16.msra.mxu0 %v358_v20 }
  0x5a   :  { %361 = vmatprep.subr.bf16.mxu0 %v360_v23 }
  0x5d   :  { %363 = vmatpush3.bf16.msra.mxu0 %v362_v24 }
  0x60   :  { %273 = vmatmul.mubr.f32.vlgmr.msra.gmra.mrb[0].mxu0 %v206_v25 }
 0x133   :  { %v329_v26 = vpop.f32.mrb[0].mxu0 }
 0x134   :  { %v330_v28 = vpop.f32.mrb[1].mxu0 }
 0x135   :  { %v331_v29 = vadd.f32 %v330_v28, %v329_v26 }
 0x137   :  { %v278_v30 = vadd.f32 %v331_v29, %v296_v27 }
 0x139   :  { %279 = vst [vmem:[#allocation8] sm:$0xff] %v278_v30 }
 0x13a   :  { %447 = shalt.err (!%p444_p0)
}
 0x13b   :  { %s448_s5 = scalar_lea.hbm %s556_s4, 128 }
 0x13c   :  { %p449_p1 = scmp.ne.s32.totalorder %s556_s4, %s448_s5  ;;  %p452_p2 = scmp.lt.u32.totalorder %s448_s5, %s556_s4 }
 0x13e   :  { %p454_p3 = pnand %p452_p2, %p449_p1 }
 0x140   :  { %457 = shalt.err (!%p454_p3)
}
 0x141   :  { %289 = dma.vmem_to_hbm [thread:$0]  %s287_s27, 128, %s556_s4, [#allocation4]  }
 0x142   :  { %462 = dma.done.wait [#allocation4], 128  }
 0x143   :  { %463 = vsyncadd [#allocation4], 4294967168 }
 0x144   :  { %293 = vsyncpa [#allocation3], 1 }
 0x145   :  { %294 = vsyncpa [#allocation6], 1 }
 0x146   :  { %295 = vsyncpa [#allocation4], 1 }

</bundles_post_ra>
